<compile_context>
chip_gen: v7x
topology: tpu7x:2x2x1
jax: 0.10.0
libtpu: 0.0.40
codegen_flags: <defaults>
</compile_context>

<pallas_src>
import functools

import jax
import jax.numpy as jnp
from jax import lax
from jax.experimental import pallas as pl
from jax.experimental.pallas import tpu as pltpu

H = 128                  # padded hidden width (enc_h_dim=80 and all heads fit in 128 lanes)
TILE_B_DEFAULT = 2048    # rows per grid step (multiple of 16 for bf16-friendly sublanes)


# ----------------------------------------------------------------------------
# Pallas kernel: fused ORIC forward on one batch tile.
# Bias rows: 0=fc1, 1=fc2, 2=fcz, 3=fused heads-1, 4=fused heads-2, 5=fused out.
# Square-weight stack rows: 0=fc2, 1=fcz, 2=heads-1, 3=heads-2, 4=out.
# Output slab layout (128 lanes): cols 0..enc_h-1 = z, col enc_h = y0,
# col enc_h+1 = y1, col enc_h+2 = t_pred, rest exactly 0.
# ----------------------------------------------------------------------------
def _oric_kernel(x_ref, w_fc1_ref, w_sq_ref, b_ref, out_ref, *, out_shift):
    def dense(h, w, brow):
        # bf16 operands on the MXU, f32 accumulation, f32 bias add.
        return jnp.dot(h.astype(jnp.bfloat16), w,
                       preferred_element_type=jnp.float32) + b_ref[brow:brow + 1, :]

    x = x_ref[...]

    # Shared trunk (cols >= enc_h_dim stay exactly zero because pads are zero).
    h = jax.nn.relu(dense(x, w_fc1_ref[...], 0))
    h = jax.nn.relu(dense(h, w_sq_ref[0], 1))
    z = jax.nn.relu(dense(h, w_sq_ref[1], 2))            # (TILE_B, 128)

    # Fused heads-1: col 0 = treat logit, cols 1..1+E = y0_fc1, 1+E..1+2E = y1_fc1.
    heads1 = dense(z, w_sq_ref[2], 3)

    # Treatment prediction: lane-dense sigmoid (EUP), then XLU roll moves the
    # treat column 0 -> column 2 (no narrow slice).
    t_at_col2 = pltpu.roll(jax.nn.sigmoid(heads1), shift=2, axis=1)

    # Fused heads-2 (block-diagonal y0_fc2 / y1_fc2; row 0 and pad rows are zero,
    # so the relu'd treat-logit column cannot leak into the outcomes).
    h2 = jax.nn.relu(dense(jax.nn.relu(heads1), w_sq_ref[3], 4))

    # Fused outputs: col 0 = y0, col 1 = y1, all other cols exactly 0.
    out3 = dense(h2, w_sq_ref[4], 5)

    # Drop t_pred into column 2 -> y01t = [y0 | y1 | t | 0 ...].
    col = lax.broadcasted_iota(jnp.int32, out3.shape, 1)
    y01t = jnp.where(col == 2, t_at_col2, out3)

    # Overlay [y0 | y1 | t] into z's exactly-zero pad lanes: single lane-dense
    # (TILE_B, 128) store (roll is XLU, add is VPU).
    out_ref[...] = (z + pltpu.roll(y01t, shift=out_shift, axis=1)).astype(out_ref.dtype)


# ----------------------------------------------------------------------------
# Parameter initialization (deterministic, PyTorch nn.Linear-style uniform),
# stored as (in_features, out_features) so the hot path is x @ W + b.
# ----------------------------------------------------------------------------
def init_linear(key, fan_in, fan_out):
    kw, kb = jax.random.split(key)
    bound = 1.0 / jnp.sqrt(jnp.float32(fan_in))
    w = jax.random.uniform(kw, (fan_in, fan_out), jnp.float32, -bound, bound)
    b = jax.random.uniform(kb, (1, fan_out), jnp.float32, -bound, bound)
    return w, b


def init_oric_params(key, input_dim, enc_h_dim=80, enc_out_dim=50):
    keys = jax.random.split(key, 10)
    return {
        "fc1": init_linear(keys[0], input_dim, enc_h_dim),
        "fc2": init_linear(keys[1], enc_h_dim, enc_h_dim),
        "fcz": init_linear(keys[2], enc_h_dim, enc_h_dim),
        "treat_out": init_linear(keys[3], enc_h_dim, 1),
        "y0_fc1": init_linear(keys[4], enc_h_dim, enc_out_dim),
        "y0_fc2": init_linear(keys[5], enc_out_dim, enc_out_dim),
        "y0_out": init_linear(keys[6], enc_out_dim, 1),
        "y1_fc1": init_linear(keys[7], enc_h_dim, enc_out_dim),
        "y1_fc2": init_linear(keys[8], enc_out_dim, enc_out_dim),
        "y1_out": init_linear(keys[9], enc_out_dim, 1),
    }


# ----------------------------------------------------------------------------
# Pack the 10 (W, b) pairs into 3 lane-dense kernel operands (exact zero-pad).
# Weights in bf16 (resident), biases in f32.
# ----------------------------------------------------------------------------
def pack_oric_params(params, input_dim, enc_h_dim=80, enc_out_dim=50):
    assert enc_h_dim + 3 <= H and 1 + 2 * enc_out_dim <= H

    def pad_cols(w):
        return jnp.pad(w, ((0, 0), (0, H - w.shape[1])))

    def pad_full(w):
        return jnp.pad(w, ((0, H - w.shape[0]), (0, H - w.shape[1])))

    def pad_b(b):
        return jnp.pad(b.reshape(1, -1), ((0, 0), (0, H - b.size)))

    w_fc1, b_fc1 = params["fc1"]
    w_fc2, b_fc2 = params["fc2"]
    w_fcz, b_fcz = params["fcz"]
    w_t, b_t = params["treat_out"]
    w_y0a, b_y0a = params["y0_fc1"]
    w_y0b, b_y0b = params["y0_fc2"]
    w_y0c, b_y0c = params["y0_out"]
    w_y1a, b_y1a = params["y1_fc1"]
    w_y1b, b_y1b = params["y1_fc2"]
    w_y1c, b_y1c = params["y1_out"]

    W_fc1 = pad_cols(w_fc1)                      # (input_dim, 128)
    W_fc2 = pad_full(w_fc2)                      # (128, 128)
    W_fcz = pad_full(w_fcz)

    # Fused heads-1: z @ [w_t | w_y0_fc1 | w_y1_fc1]  (cols 0, 1..1+E, 1+E..1+2E).
    W_h1 = jnp.zeros((H, H), jnp.float32)
    W_h1 = W_h1.at[:enc_h_dim, 0:1].set(w_t)
    W_h1 = W_h1.at[:enc_h_dim, 1:1 + enc_out_dim].set(w_y0a)
    W_h1 = W_h1.at[:enc_h_dim, 1 + enc_out_dim:1 + 2 * enc_out_dim].set(w_y1a)

    # Fused heads-2: block-diagonal [y0_fc2 ; y1_fc2] (input rows offset by 1 for t col).
    W_h2 = jnp.zeros((H, H), jnp.float32)
    W_h2 = W_h2.at[1:1 + enc_out_dim, 0:enc_out_dim].set(w_y0b)
    W_h2 = W_h2.at[1 + enc_out_dim:1 + 2 * enc_out_dim, enc_out_dim:2 * enc_out_dim].set(w_y1b)

    # Fused outputs: col 0 = y0_out, col 1 = y1_out.
    W_out = jnp.zeros((H, H), jnp.float32)
    W_out = W_out.at[0:enc_out_dim, 0:1].set(w_y0c)
    W_out = W_out.at[enc_out_dim:2 * enc_out_dim, 1:2].set(w_y1c)

    W_sq = jnp.stack([W_fc2, W_fcz, W_h1, W_h2, W_out])   # (5, 128, 128)

    B_h1 = jnp.zeros((1, H), jnp.float32)
    B_h1 = B_h1.at[0, 0:1].set(b_t.reshape(-1))
    B_h1 = B_h1.at[0, 1:1 + enc_out_dim].set(b_y0a.reshape(-1))
    B_h1 = B_h1.at[0, 1 + enc_out_dim:1 + 2 * enc_out_dim].set(b_y1a.reshape(-1))

    B_h2 = jnp.zeros((1, H), jnp.float32)
    B_h2 = B_h2.at[0, 0:enc_out_dim].set(b_y0b.reshape(-1))
    B_h2 = B_h2.at[0, enc_out_dim:2 * enc_out_dim].set(b_y1b.reshape(-1))

    B_out = jnp.zeros((1, H), jnp.float32)
    B_out = B_out.at[0, 0:1].set(b_y0c.reshape(-1))
    B_out = B_out.at[0, 1:2].set(b_y1c.reshape(-1))

    bias = jnp.concatenate(
        [pad_b(b_fc1), pad_b(b_fc2), pad_b(b_fcz), B_h1, B_h2, B_out,
         jnp.zeros((2, H), jnp.float32)], axis=0)          # (8, 128), f32

    return {
        "w_fc1": W_fc1.astype(jnp.bfloat16),
        "w_sq": W_sq.astype(jnp.bfloat16),
        "bias": bias,
    }


def _round_up(n, m):
    return ((n + m - 1) // m) * m


# ----------------------------------------------------------------------------
# Jitted entry point: returns the packed (B, 128) output slab (consumers may
# slice lazily; avoids a second HBM pass when only some outputs are needed).
# ----------------------------------------------------------------------------
@functools.partial(jax.jit, static_argnames=("enc_h_dim", "tile_b_max"))
def oric_forward_packed(x, packed, enc_h_dim=80, tile_b_max=TILE_B_DEFAULT):
    B, input_dim = x.shape

    # Tile sizing: big tiles to amortize per-step overhead, but keep >= ~4 grid
    # steps so both v7x TensorCores get work; multiples of 16 for bf16 sublanes.
    tile_b = min(tile_b_max, _round_up(-(-B // 4), 16))
    tile_b = max(16, (tile_b // 16) * 16)
    B_pad = _round_up(B, tile_b)
    if B_pad != B:
        x = jnp.pad(x, ((0, B_pad - B), (0, 0)))
    grid = (B_pad // tile_b,)

    flops = 2 * B_pad * (input_dim * H + 5 * H * H)
    bytes_accessed = (x.dtype.itemsize * B_pad * input_dim      # x tiles
                      + 4 * B_pad * H                           # f32 output slab
                      + 2 * (input_dim * H + 5 * H * H)         # bf16 resident weights
                      + 4 * 8 * H)                              # f32 bias slab

    kernel = functools.partial(_oric_kernel, out_shift=enc_h_dim)

    out = pl.pallas_call(
        kernel,
        out_shape=jax.ShapeDtypeStruct((B_pad, H), jnp.float32),
        grid_spec=pltpu.PrefetchScalarGridSpec(
            num_scalar_prefetch=0,
            grid=grid,
            in_specs=[
                pl.BlockSpec((tile_b, input_dim), lambda i: (i, 0)),   # x tile (pipelined)
                pl.BlockSpec((input_dim, H), lambda i: (0, 0)),        # fc1 weight (resident)
                pl.BlockSpec((5, H, H), lambda i: (0, 0, 0)),          # square-weight stack
                pl.BlockSpec((8, H), lambda i: (0, 0)),                # bias slab
            ],
            out_specs=pl.BlockSpec((tile_b, H), lambda i: (i, 0)),
        ),
        compiler_params=pltpu.CompilerParams(
            dimension_semantics=("parallel",),
        ),
        cost_estimate=pl.CostEstimate(
            flops=flops, transcendentals=B_pad, bytes_accessed=bytes_accessed),
    )(x, packed["w_fc1"], packed["w_sq"], packed["bias"])

    return out[:B]


def oric_forward(x, packed, enc_h_dim=80, tile_b_max=TILE_B_DEFAULT):
    """Module-parity convenience wrapper: returns (y0, y1, t_pred, z)."""
    out = oric_forward_packed(x, packed, enc_h_dim=enc_h_dim, tile_b_max=tile_b_max)
    y0 = out[:, enc_h_dim:enc_h_dim + 1]
    y1 = out[:, enc_h_dim + 1:enc_h_dim + 2]
    t_pred = out[:, enc_h_dim + 2:enc_h_dim + 3]
    z = out[:, 0:enc_h_dim]
    return y0, y1, t_pred, z


# Pure-JAX f32 reference for correctness checking (mirrors the PyTorch module).
def oric_reference(x, params):
    def dense(h, name):
        w, b = params[name]
        return h @ w + b

    h = jax.nn.relu(dense(x, "fc1"))
    h = jax.nn.relu(dense(h, "fc2"))
    z = jax.nn.relu(dense(h, "fcz"))
    t_pred = jax.nn.sigmoid(dense(z, "treat_out"))
    y0 = jax.nn.relu(dense(z, "y0_fc1"))
    y0 = jax.nn.relu(dense(y0, "y0_fc2"))
    y0 = dense(y0, "y0_out")
    y1 = jax.nn.relu(dense(z, "y1_fc1"))
    y1 = jax.nn.relu(dense(y1, "y1_fc2"))
    y1 = dense(y1, "y1_out")
    return y0, y1, t_pred, z


if __name__ == "__main__":
    key = jax.random.PRNGKey(0)
    k_x1, k_x2, k_p = jax.random.split(key, 3)

    input_dim = 32
    enc_h_dim = 80
    enc_out_dim = 50

    params = init_oric_params(k_p, input_dim, enc_h_dim, enc_out_dim)
    packed = pack_oric_params(params, input_dim, enc_h_dim, enc_out_dim)

    # bf16 matmul operands (f32 accumulation) -> compare against the f32
    # reference with loosened tolerances.
    ATOL = 5e-2
    RTOL = 5e-2

    # Test 1: tiny batch, single-tile grid.
    x1 = jax.random.normal(k_x1, (8, input_dim), jnp.float32)
    out1 = oric_forward(x1, packed, enc_h_dim=enc_h_dim)
    jax.block_until_ready(out1)
    ref1 = oric_reference(x1, params)
    for a, b in zip(out1, ref1):
        assert a.shape == b.shape
        assert jnp.allclose(a, b, atol=ATOL, rtol=RTOL)

    # Test 2: ragged batch with a multi-step grid (exercises padding + pipelining).
    x2 = jax.random.normal(k_x2, (37, input_dim), jnp.float32)
    out2 = oric_forward(x2, packed, enc_h_dim=enc_h_dim, tile_b_max=16)
    jax.block_until_ready(out2)
    ref2 = oric_reference(x2, params)
    for a, b in zip(out2, ref2):
        assert a.shape == b.shape
        assert jnp.allclose(a, b, atol=ATOL, rtol=RTOL)

    print("KERNEL_OK")
</pallas_src>

<mosaic_0001>
module attributes {stable_mosaic.version = 11 : i64} {
  func.func @_oric_kernel(%arg0: i32, %arg1: memref<16x32xf32, #tpu.memory_space<vmem>>, %arg2: memref<32x128xbf16, #tpu.memory_space<vmem>>, %arg3: memref<5x128x128xbf16, #tpu.memory_space<vmem>>, %arg4: memref<8x128xf32, #tpu.memory_space<vmem>>, %arg5: memref<16x128xf32, #tpu.memory_space<vmem>>) attributes {dimension_semantics = [#tpu.dimension_semantics<parallel>], iteration_bounds = array<i64: 1>, scalar_prefetch = 0 : i64, scratch_operands = 0 : i64, tpu.core_type = #tpu.core_type<tc>, window_params = [{transform_indices = @transform_0, window_bounds = array<i64: 16, 32>}, {pipeline_mode = #tpu.pipeline_mode<synchronous>, transform_indices = @transform_1, window_bounds = array<i64: 32, 128>}, {pipeline_mode = #tpu.pipeline_mode<synchronous>, transform_indices = @transform_2, window_bounds = array<i64: 5, 128, 128>}, {pipeline_mode = #tpu.pipeline_mode<synchronous>, transform_indices = @transform_3, window_bounds = array<i64: 8, 128>}, {transform_indices = @transform_4, window_bounds = array<i64: 16, 128>}]} {
    %c0 = arith.constant 0 : index
    %c0_0 = arith.constant 0 : index
    %0 = vector.load %arg1[%c0, %c0_0] : memref<16x32xf32, #tpu.memory_space<vmem>>, vector<16x32xf32>
    %c0_1 = arith.constant 0 : index
    %c0_2 = arith.constant 0 : index
    %1 = vector.load %arg2[%c0_1, %c0_2] : memref<32x128xbf16, #tpu.memory_space<vmem>>, vector<32x128xbf16>
    %2 = arith.truncf %0 : vector<16x32xf32> to vector<16x32xbf16>
    %cst = arith.constant dense<0.000000e+00> : vector<16x128xf32>
    %3 = tpu.matmul %2, %1, %cst {dimension_numbers = #tpu.dot_dimension_numbers<[1], [0], [0], [1], [0, 0, 1, 1], [], []>} : vector<16x32xbf16>, vector<32x128xbf16>, vector<16x128xf32> -> vector<16x128xf32>
    %c0_3 = arith.constant 0 : index
    %c0_4 = arith.constant 0 : index
    %4 = vector.load %arg4[%c0_3, %c0_4] : memref<8x128xf32, #tpu.memory_space<vmem>>, vector<1x128xf32>
    %5 = vector.broadcast %4 : vector<1x128xf32> to vector<16x128xf32>
    %6 = arith.addf %3, %5 : vector<16x128xf32>
    %cst_5 = arith.constant 0.000000e+00 : f32
    %7 = vector.broadcast %cst_5 : f32 to vector<16x128xf32>
    %8 = arith.maximumf %6, %7 : vector<16x128xf32>
    %c0_6 = arith.constant 0 : index
    %c0_7 = arith.constant 0 : index
    %c0_8 = arith.constant 0 : index
    %9 = vector.load %arg3[%c0_6, %c0_7, %c0_8] : memref<5x128x128xbf16, #tpu.memory_space<vmem>>, vector<1x128x128xbf16>
    %10 = vector.shape_cast %9 : vector<1x128x128xbf16> to vector<128x128xbf16>
    %11 = arith.truncf %8 : vector<16x128xf32> to vector<16x128xbf16>
    %cst_9 = arith.constant dense<0.000000e+00> : vector<16x128xf32>
    %12 = tpu.matmul %11, %10, %cst_9 {dimension_numbers = #tpu.dot_dimension_numbers<[1], [0], [0], [1], [0, 0, 1, 1], [], []>} : vector<16x128xbf16>, vector<128x128xbf16>, vector<16x128xf32> -> vector<16x128xf32>
    %c1 = arith.constant 1 : index
    %c0_10 = arith.constant 0 : index
    %13 = vector.load %arg4[%c1, %c0_10] : memref<8x128xf32, #tpu.memory_space<vmem>>, vector<1x128xf32>
    %14 = vector.broadcast %13 : vector<1x128xf32> to vector<16x128xf32>
    %15 = arith.addf %12, %14 : vector<16x128xf32>
    %cst_11 = arith.constant 0.000000e+00 : f32
    %16 = vector.broadcast %cst_11 : f32 to vector<16x128xf32>
    %17 = arith.maximumf %15, %16 : vector<16x128xf32>
    %c1_12 = arith.constant 1 : index
    %c0_13 = arith.constant 0 : index
    %c0_14 = arith.constant 0 : index
    %18 = vector.load %arg3[%c1_12, %c0_13, %c0_14] : memref<5x128x128xbf16, #tpu.memory_space<vmem>>, vector<1x128x128xbf16>
    %19 = vector.shape_cast %18 : vector<1x128x128xbf16> to vector<128x128xbf16>
    %20 = arith.truncf %17 : vector<16x128xf32> to vector<16x128xbf16>
    %cst_15 = arith.constant dense<0.000000e+00> : vector<16x128xf32>
    %21 = tpu.matmul %20, %19, %cst_15 {dimension_numbers = #tpu.dot_dimension_numbers<[1], [0], [0], [1], [0, 0, 1, 1], [], []>} : vector<16x128xbf16>, vector<128x128xbf16>, vector<16x128xf32> -> vector<16x128xf32>
    %c2 = arith.constant 2 : index
    %c0_16 = arith.constant 0 : index
    %22 = vector.load %arg4[%c2, %c0_16] : memref<8x128xf32, #tpu.memory_space<vmem>>, vector<1x128xf32>
    %23 = vector.broadcast %22 : vector<1x128xf32> to vector<16x128xf32>
    %24 = arith.addf %21, %23 : vector<16x128xf32>
    %cst_17 = arith.constant 0.000000e+00 : f32
    %25 = vector.broadcast %cst_17 : f32 to vector<16x128xf32>
    %26 = arith.maximumf %24, %25 : vector<16x128xf32>
    %c2_18 = arith.constant 2 : index
    %c0_19 = arith.constant 0 : index
    %c0_20 = arith.constant 0 : index
    %27 = vector.load %arg3[%c2_18, %c0_19, %c0_20] : memref<5x128x128xbf16, #tpu.memory_space<vmem>>, vector<1x128x128xbf16>
    %28 = vector.shape_cast %27 : vector<1x128x128xbf16> to vector<128x128xbf16>
    %29 = arith.truncf %26 : vector<16x128xf32> to vector<16x128xbf16>
    %cst_21 = arith.constant dense<0.000000e+00> : vector<16x128xf32>
    %30 = tpu.matmul %29, %28, %cst_21 {dimension_numbers = #tpu.dot_dimension_numbers<[1], [0], [0], [1], [0, 0, 1, 1], [], []>} : vector<16x128xbf16>, vector<128x128xbf16>, vector<16x128xf32> -> vector<16x128xf32>
    %c3 = arith.constant 3 : index
    %c0_22 = arith.constant 0 : index
    %31 = vector.load %arg4[%c3, %c0_22] : memref<8x128xf32, #tpu.memory_space<vmem>>, vector<1x128xf32>
    %32 = vector.broadcast %31 : vector<1x128xf32> to vector<16x128xf32>
    %33 = arith.addf %30, %32 : vector<16x128xf32>
    %34 = arith.negf %33 : vector<16x128xf32>
    %35 = math.exp %34 : vector<16x128xf32>
    %cst_23 = arith.constant 1.000000e+00 : f32
    %36 = vector.broadcast %cst_23 : f32 to vector<16x128xf32>
    %37 = arith.addf %36, %35 : vector<16x128xf32>
    %38 = arith.divf %36, %37 : vector<16x128xf32>
    %c2_i32 = arith.constant 2 : i32
    %39 = tpu.dynamic_rotate %38 by %c2_i32 dim 1 : vector<16x128xf32>, i32 -> vector<16x128xf32>
    %cst_24 = arith.constant 0.000000e+00 : f32
    %40 = vector.broadcast %cst_24 : f32 to vector<16x128xf32>
    %41 = arith.maximumf %33, %40 : vector<16x128xf32>
    %c3_25 = arith.constant 3 : index
    %c0_26 = arith.constant 0 : index
    %c0_27 = arith.constant 0 : index
    %42 = vector.load %arg3[%c3_25, %c0_26, %c0_27] : memref<5x128x128xbf16, #tpu.memory_space<vmem>>, vector<1x128x128xbf16>
    %43 = vector.shape_cast %42 : vector<1x128x128xbf16> to vector<128x128xbf16>
    %44 = arith.truncf %41 : vector<16x128xf32> to vector<16x128xbf16>
    %cst_28 = arith.constant dense<0.000000e+00> : vector<16x128xf32>
    %45 = tpu.matmul %44, %43, %cst_28 {dimension_numbers = #tpu.dot_dimension_numbers<[1], [0], [0], [1], [0, 0, 1, 1], [], []>} : vector<16x128xbf16>, vector<128x128xbf16>, vector<16x128xf32> -> vector<16x128xf32>
    %c4 = arith.constant 4 : index
    %c0_29 = arith.constant 0 : index
    %46 = vector.load %arg4[%c4, %c0_29] : memref<8x128xf32, #tpu.memory_space<vmem>>, vector<1x128xf32>
    %47 = vector.broadcast %46 : vector<1x128xf32> to vector<16x128xf32>
    %48 = arith.addf %45, %47 : vector<16x128xf32>
    %cst_30 = arith.constant 0.000000e+00 : f32
    %49 = vector.broadcast %cst_30 : f32 to vector<16x128xf32>
    %50 = arith.maximumf %48, %49 : vector<16x128xf32>
    %c4_31 = arith.constant 4 : index
    %c0_32 = arith.constant 0 : index
    %c0_33 = arith.constant 0 : index
    %51 = vector.load %arg3[%c4_31, %c0_32, %c0_33] : memref<5x128x128xbf16, #tpu.memory_space<vmem>>, vector<1x128x128xbf16>
    %52 = vector.shape_cast %51 : vector<1x128x128xbf16> to vector<128x128xbf16>
    %53 = arith.truncf %50 : vector<16x128xf32> to vector<16x128xbf16>
    %cst_34 = arith.constant dense<0.000000e+00> : vector<16x128xf32>
    %54 = tpu.matmul %53, %52, %cst_34 {dimension_numbers = #tpu.dot_dimension_numbers<[1], [0], [0], [1], [0, 0, 1, 1], [], []>} : vector<16x128xbf16>, vector<128x128xbf16>, vector<16x128xf32> -> vector<16x128xf32>
    %c5 = arith.constant 5 : index
    %c0_35 = arith.constant 0 : index
    %55 = vector.load %arg4[%c5, %c0_35] : memref<8x128xf32, #tpu.memory_space<vmem>>, vector<1x128xf32>
    %56 = vector.broadcast %55 : vector<1x128xf32> to vector<16x128xf32>
    %57 = arith.addf %54, %56 : vector<16x128xf32>
    %58 = tpu.iota {dimensions = array<i32: 1>} : vector<16x128xi32>
    %c2_i32_36 = arith.constant 2 : i32
    %59 = vector.broadcast %c2_i32_36 : i32 to vector<16x128xi32>
    %60 = arith.cmpi eq, %58, %59 : vector<16x128xi32>
    %61 = arith.select %60, %39, %57 : vector<16x128xi1>, vector<16x128xf32>
    %c80_i32 = arith.constant 80 : i32
    %62 = tpu.dynamic_rotate %61 by %c80_i32 dim 1 : vector<16x128xf32>, i32 -> vector<16x128xf32>
    %63 = arith.addf %26, %62 : vector<16x128xf32>
    %c0_37 = arith.constant 0 : index
    %c0_38 = arith.constant 0 : index
    %64 = vector.load %arg5[%c0_37, %c0_38] : memref<16x128xf32, #tpu.memory_space<vmem>>, vector<16x128xf32>
    tpu.vector_store %arg5[%c0_37, %c0_38], %63 {strides = array<i32>} : memref<16x128xf32, #tpu.memory_space<vmem>>, vector<16x128xf32>,
    return
  }
  func.func @transform_0(%arg0: i32) -> (i32, i32) {
    %c0_i32 = arith.constant 0 : i32
    %c0_i32_0 = arith.constant 0 : i32
    return %arg0, %c0_i32 : i32, i32
  }
  func.func @transform_1(%arg0: i32) -> (i32, i32) {
    %c0_i32 = arith.constant 0 : i32
    %c0_i32_0 = arith.constant 0 : i32
    %c0_i32_1 = arith.constant 0 : i32
    return %c0_i32, %c0_i32_0 : i32, i32
  }
  func.func @transform_2(%arg0: i32) -> (i32, i32, i32) {
    %c0_i32 = arith.constant 0 : i32
    %c0_i32_0 = arith.constant 0 : i32
    %c0_i32_1 = arith.constant 0 : i32
    %c0_i32_2 = arith.constant 0 : i32
    return %c0_i32, %c0_i32_0, %c0_i32_1 : i32, i32, i32
  }
  func.func @transform_3(%arg0: i32) -> (i32, i32) {
    %c0_i32 = arith.constant 0 : i32
    %c0_i32_0 = arith.constant 0 : i32
    %c0_i32_1 = arith.constant 0 : i32
    return %c0_i32, %c0_i32_0 : i32, i32
  }
  func.func @transform_4(%arg0: i32) -> (i32, i32) {
    %c0_i32 = arith.constant 0 : i32
    %c0_i32_0 = arith.constant 0 : i32
    return %arg0, %c0_i32 : i32, i32
  }
}

</mosaic_0001>

<bundles_post_ra>
// kernel: oric_forward_packed.1
= control target key start
LH: loop header
LB: loop body
LE: loop exit
PB: predicated region body
PF: predicated region fallthrough
CT: control target
= control target key end

     0   :  { %9 = vsyncpa [#allocation3], 0  ;;  %s992_s15 = smov [#allocation2]   ;;  %s1140_s0 = inlined_call_operand.vmem [shape: f32[16,32], index: 0, kind: input, shape index: {}]   ;;  %s1141_s1 = inlined_call_operand.vmem [shape: bf16[32,128], index: 1, kind: input, shape index: {}]   ;;  %s1142_s2 = inlined_call_operand.hbm [shape: bf16[5,128,128], index: 2, kind: input, shape index: {}]   ;;  %s1143_s3 = inlined_call_operand.vmem [shape: f32[8,128], index: 3, kind: input, shape index: {}]   ;;  %s1144_s4 = inlined_call_operand.vmem [shape: f32[16,128], index: 4, kind: output, shape index: {}]  }
   0x1   :  { %s19_s16 = sshll.u32 %s992_s15, 4  ;;  %s968_s19 = scalar_lea.hbm %s1142_s2, 5120  ;;  %s20_s16 = int_to_ptr.vmem [resolvable:$true] %s19_s16 }
   0x2   :  { %p969_p0 = scmp.ne.s32.totalorder %s1142_s2, %s968_s19  ;;  %p972_p1 = scmp.lt.u32.totalorder %s968_s19, %s1142_s2 }
   0x4   :  { %p974_p2 = pnand %p972_p1, %p969_p0 }
   0x6   :  { %977 = shalt.err (!%p974_p2)
}
   0x7   :  { %s978_s24 = scalar_lea.vmem %s20_s16, 5120  ;;  %p983_p4 = scmp.lt.s32.totalorder %s20_s16, %s20_s16 }
   0x8   :  { %p979_p3 = scmp.ne.s32.totalorder %s20_s16, %s978_s24  ;;  %p984_p5 = scmp.lt.s32.totalorder %s978_s24, %s978_s24 }
   0xa   :  { %p985_p6 = por %p984_p5, %p983_p4 }
   0xc   :  { %p986_p7 = pnand %p985_p6, %p979_p3 }
   0xe   :  { %989 = shalt.err (!%p986_p7)
}
   0xf   :  { %s993_s25 = smov 64   ;;  %s994_s26 = smov 4  }
  0x10   :  { %25 = dma.hbm_to_vmem [thread:$0]  %s1142_s2, 5120, %s20_s16, [#allocation3], %s993_s25, %s993_s25, %s994_s26  }
  0x11   :  { %990 = dma.done.wait [#allocation3], 5120  }
  0x12   :  { %991 = vsyncadd [#allocation3], 4294962176  ;;  %v995_v0 = vmov 0.0   ;;  %vm996_vm0 = vmmov 0   ;;  %v918_v1 = vld [vmem:[%s1141_s1] sm:$0xff]   ;;  %v919_v2 = vld [vmem:[%s1141_s1 + $0x8] sm:$0xff]  }
  0x13   :  { %803 = vmatprep.subr.bf16.mxu0 %v995_v0  ;;  %807 = vmatprep.mubr.msk.bf16.mxu0 %vm996_vm0, %v995_v0  ;;  %v32_v3 = vld [vmem:[%s1140_s0] sm:$0xff]  ;;  %v33_v4 = vld [vmem:[%s1140_s0 + $0x8] sm:$0xff]  ;;  %v920_v5 = vld [vmem:[#allocation2] sm:$0xff]   ;;  %vm56_vm1 = vcmask 261120   ;;  %s997_s16 = smov 2   ;;  %s998_s21 = smov 80  }
  0x14   :  { %811 = vmatprep.subr.bf16.mxu1 %v995_v0  ;;  %827 = vmatprep.mubr.msk.bf16.mxu1 %vm996_vm0, %v995_v0  ;;  %v38_v6 = vpack.c.bf16 %v33_v4, %v32_v3  ;;  %v921_v7 = vld [vmem:[#allocation2 + $0x8] sm:$0xff]   ;;  %v922_v8 = vld [vmem:[#allocation2 + $0x10] sm:$0xff]   ;;  %v923_v9 = vld [vmem:[#allocation2 + $0x18] sm:$0xff]  }
  0x15   :  { %804 = vmatpush3.bf16.msra.mxu0 %v918_v1  ;;  %812 = vmatpush3.bf16.msra.mxu1 %v920_v5  ;;  %v924_v10 = vld [vmem:[#allocation2 + $0x20] sm:$0xff]   ;;  %v925_v11 = vld [vmem:[#allocation2 + $0x28] sm:$0xff]   ;;  %v926_v12 = vld [vmem:[#allocation2 + $0x30] sm:$0xff]  }
  0x16   :  { %805 = vmatprep.subr.bf16.mxu0 %v995_v0  ;;  %813 = vmatprep.subr.bf16.mxu1 %v995_v0  ;;  %v927_v13 = vld [vmem:[#allocation2 + $0x38] sm:$0xff]   ;;  %v928_v14 = vld [vmem:[#allocation2 + $0x40] sm:$0xff]   ;;  %v929_v15 = vld [vmem:[#allocation2 + $0x48] sm:$0xff]  }
  0x17   :  { %v930_v16 = vld [vmem:[#allocation2 + $0x50] sm:$0xff]   ;;  %v931_v17 = vld [vmem:[#allocation2 + $0x58] sm:$0xff]   ;;  %v932_v18 = vld [vmem:[#allocation2 + $0x60] sm:$0xff]  }
  0x18   :  { %v933_v19 = vld [vmem:[#allocation2 + $0x68] sm:$0xff]   ;;  %v704_v20 = vld [vmem:[%s1143_s3] ss:$0 sm:$0xff]  ;;  %v935_v31 = vld [vmem:[#allocation2 + $0x78] sm:$0xff]  }
  0x19   :  { %806 = vmatpush3.bf16.msra.mxu0 %v919_v2  ;;  %814 = vmatpush3.bf16.msra.mxu1 %v921_v7  ;;  %v934_v30 = vld [vmem:[#allocation2 + $0x70] sm:$0xff]   ;;  %v936_v32 = vld [vmem:[#allocation2 + $0x80] sm:$0xff]   ;;  %v937_v33 = vld [vmem:[#allocation2 + $0x88] sm:$0xff]  }
  0x1a   :  { %831 = vmatprep.subr.bf16.mxu0 %v995_v0  ;;  %815 = vmatprep.subr.bf16.mxu1 %v995_v0  ;;  %v938_v34 = vld [vmem:[#allocation2 + $0x90] sm:$0xff]   ;;  %v939_v35 = vld [vmem:[#allocation2 + $0x98] sm:$0xff]   ;;  %v940_v36 = vld [vmem:[#allocation2 + $0xa0] sm:$0xff]  }
  0x1b   :  { %v941_v37 = vld [vmem:[#allocation2 + $0xa8] sm:$0xff]   ;;  %v708_v38 = vld [vmem:[%s1143_s3 + $0x1] ss:$0 sm:$0xff]  ;;  %v943_v49 = vld [vmem:[#allocation2 + $0xb8] sm:$0xff]  }
  0x1c   :  { %808 = vmatmul.mubr.msk.bf16.vlgmr.msra.gmra.mrb[0].mxu0 %vm56_vm1, %v38_v6  ;;  %v942_v48 = vld [vmem:[#allocation2 + $0xb0] sm:$0xff]   ;;  %v944_v50 = vld [vmem:[#allocation2 + $0xc0] sm:$0xff]   ;;  %v945_v51 = vld [vmem:[#allocation2 + $0xc8] sm:$0xff]  }
  0x1d   :  { %847 = vmatprep.mubr.msk.bf16.mxu0 %vm996_vm0, %v995_v0  ;;  %816 = vmatpush3.bf16.msra.mxu1 %v922_v8  ;;  %v946_v52 = vld [vmem:[#allocation2 + $0xd0] sm:$0xff]   ;;  %v947_v53 = vld [vmem:[#allocation2 + $0xd8] sm:$0xff]   ;;  %v948_v54 = vld [vmem:[#allocation2 + $0xe0] sm:$0xff]  }
  0x1e   :  { %817 = vmatprep.subr.bf16.mxu1 %v995_v0  ;;  %832 = vmatpush3.bf16.msra.mxu0 %v928_v14  ;;  %v949_v55 = vld [vmem:[#allocation2 + $0xe8] sm:$0xff]   ;;  %v717_v56 = vld [vmem:[%s1143_s3 + $0x2] ss:$0 sm:$0xff]  ;;  %v951_v4 = vld [vmem:[#allocation2 + $0xf8] sm:$0xff]  }
  0x1f   :  { %833 = vmatprep.subr.bf16.mxu0 %v995_v0  ;;  %v950_v3 = vld [vmem:[#allocation2 + $0xf0] sm:$0xff]  }
  0x20   :  { %v726_v5 = vld [vmem:[%s1143_s3 + $0x3] ss:$0 sm:$0xff] }
  0x21   :  { %818 = vmatpush3.bf16.msra.mxu1 %v923_v9 }
  0x22   :  { %819 = vmatprep.subr.bf16.mxu1 %v995_v0  ;;  %834 = vmatpush3.bf16.msra.mxu0 %v929_v15 }
  0x23   :  { %835 = vmatprep.subr.bf16.mxu0 %v995_v0 }
  0x25   :  { %820 = vmatpush3.bf16.msra.mxu1 %v924_v10 }
  0x26   :  { %821 = vmatprep.subr.bf16.mxu1 %v995_v0  ;;  %836 = vmatpush3.bf16.msra.mxu0 %v930_v16 }
  0x27   :  { %837 = vmatprep.subr.bf16.mxu0 %v995_v0 }
  0x29   :  { %822 = vmatpush3.bf16.msra.mxu1 %v925_v11 }
  0x2a   :  { %823 = vmatprep.subr.bf16.mxu1 %v995_v0  ;;  %838 = vmatpush3.bf16.msra.mxu0 %v931_v17 }
  0x2b   :  { %839 = vmatprep.subr.bf16.mxu0 %v995_v0 }
  0x2d   :  { %824 = vmatpush3.bf16.msra.mxu1 %v926_v12 }
  0x2e   :  { %825 = vmatprep.subr.bf16.mxu1 %v995_v0  ;;  %840 = vmatpush3.bf16.msra.mxu0 %v932_v18 }
  0x2f   :  { %841 = vmatprep.subr.bf16.mxu0 %v995_v0 }
  0x31   :  { %826 = vmatpush3.bf16.msra.mxu1 %v927_v13 }
  0x32   :  { %851 = vmatprep.subr.bf16.mxu1 %v995_v0  ;;  %842 = vmatpush3.bf16.msra.mxu0 %v933_v19 }
  0x33   :  { %843 = vmatprep.subr.bf16.mxu0 %v995_v0 }
  0x36   :  { %844 = vmatpush3.bf16.msra.mxu0 %v934_v30  ;;  %v959_v30 = vld [vmem:[#allocation2 + $0x138] sm:$0xff]  }
  0x37   :  { %845 = vmatprep.subr.bf16.mxu0 %v995_v0 }
  0x3a   :  { %846 = vmatpush3.bf16.msra.mxu0 %v935_v31  ;;  %v737_v31 = vld [vmem:[%s1143_s3 + $0x4] ss:$0 sm:$0xff] }
  0x3b   :  { %871 = vmatprep.subr.bf16.mxu0 %v995_v0 }
  0xef   :  { %v94_v21 = vpop.f32.mrb[0].mxu0 }
  0xf0   :  { %v95_v22 = vadd.f32 %v704_v20, %v94_v21  ;;  %v809_v23 = vpop.f32.mrb[1].mxu0  ;;  %v952_v21 = vld [vmem:[#allocation2 + $0x100] sm:$0xff]  }
  0xf1   :  { %v97_v24 = vpop.f32.mrb[2].mxu0  ;;  %v954_v23 = vld [vmem:[#allocation2 + $0x110] sm:$0xff]  }
  0xf2   :  { %v98_v25 = vadd.f32 %v704_v20, %v97_v24  ;;  %v810_v26 = vpop.f32.mrb[3].mxu0  ;;  %v101_v27 = vmax.f32 %v95_v22, 0.0  ;;  %v953_v22 = vld [vmem:[#allocation2 + $0x108] sm:$0xff]  }
  0xf4   :  { %v102_v28 = vmax.f32 %v98_v25, 0.0  ;;  %v955_v25 = vld [vmem:[#allocation2 + $0x118] sm:$0xff]  }
  0xf6   :  { %v119_v29 = vpack.c.bf16 %v102_v28, %v101_v27  ;;  %v956_v27 = vld [vmem:[#allocation2 + $0x120] sm:$0xff]   ;;  %v957_v28 = vld [vmem:[#allocation2 + $0x128] sm:$0xff]  }
  0xf8   :  { %828 = vmatmul.mubr.bf16.vlgmr.msra.gmra.mrb[0].mxu1 %v119_v29  ;;  %v958_v29 = vld [vmem:[#allocation2 + $0x130] sm:$0xff]  }
  0xf9   :  { %867 = vmatprep.mubr.msk.bf16.mxu1 %vm996_vm0, %v995_v0  ;;  %852 = vmatpush3.bf16.msra.mxu1 %v936_v32 }
  0xfa   :  { %853 = vmatprep.subr.bf16.mxu1 %v995_v0 }
  0xfd   :  { %854 = vmatpush3.bf16.msra.mxu1 %v937_v33 }
  0xfe   :  { %855 = vmatprep.subr.bf16.mxu1 %v995_v0 }
 0x101   :  { %856 = vmatpush3.bf16.msra.mxu1 %v938_v34 }
 0x102   :  { %857 = vmatprep.subr.bf16.mxu1 %v995_v0 }
 0x105   :  { %858 = vmatpush3.bf16.msra.mxu1 %v939_v35 }
 0x106   :  { %859 = vmatprep.subr.bf16.mxu1 %v995_v0 }
 0x109   :  { %860 = vmatpush3.bf16.msra.mxu1 %v940_v36 }
 0x10a   :  { %861 = vmatprep.subr.bf16.mxu1 %v995_v0 }
 0x10d   :  { %862 = vmatpush3.bf16.msra.mxu1 %v941_v37 }
 0x10e   :  { %863 = vmatprep.subr.bf16.mxu1 %v995_v0 }
 0x111   :  { %864 = vmatpush3.bf16.msra.mxu1 %v942_v48 }
 0x112   :  { %865 = vmatprep.subr.bf16.mxu1 %v995_v0 }
 0x115   :  { %866 = vmatpush3.bf16.msra.mxu1 %v943_v49 }
 0x116   :  { %891 = vmatprep.subr.bf16.mxu1 %v995_v0 }
 0x1cb   :  { %v207_v39 = vpop.f32.mrb[0].mxu1 }
 0x1cc   :  { %v208_v40 = vadd.f32 %v708_v38, %v207_v39  ;;  %v829_v41 = vpop.f32.mrb[1].mxu1 }
 0x1cd   :  { %v210_v42 = vpop.f32.mrb[2].mxu1  ;;  %v686_v41 = vlaneseq }
 0x1ce   :  { %v211_v43 = vadd.f32 %v708_v38, %v210_v42  ;;  %v830_v44 = vpop.f32.mrb[3].mxu1  ;;  %v214_v45 = vmax.f32 %v208_v40, 0.0 }
 0x1cf   :  { %v687_v42 = vand.u32 127, %v686_v41 }
 0x1d0   :  { %v215_v46 = vmax.f32 %v211_v43, 0.0 }
 0x1d1   :  { %vm688_vm2 = vcmp.eq.s32.totalorder %v687_v42, 2 }
 0x1d2   :  { %v233_v47 = vpack.c.bf16 %v215_v46, %v214_v45 }
 0x1d4   :  { %848 = vmatmul.mubr.bf16.vlgmr.msra.gmra.mrb[4].mxu0 %v233_v47 }
 0x1d5   :  { %887 = vmatprep.mubr.msk.bf16.mxu0 %vm996_vm0, %v995_v0  ;;  %872 = vmatpush3.bf16.msra.mxu0 %v944_v50 }
 0x1d6   :  { %873 = vmatprep.subr.bf16.mxu0 %v995_v0 }
 0x1d9   :  { %874 = vmatpush3.bf16.msra.mxu0 %v945_v51 }
 0x1da   :  { %875 = vmatprep.subr.bf16.mxu0 %v995_v0 }
 0x1dd   :  { %876 = vmatpush3.bf16.msra.mxu0 %v946_v52 }
 0x1de   :  { %877 = vmatprep.subr.bf16.mxu0 %v995_v0 }
 0x1e1   :  { %878 = vmatpush3.bf16.msra.mxu0 %v947_v53 }
 0x1e2   :  { %879 = vmatprep.subr.bf16.mxu0 %v995_v0 }
 0x1e5   :  { %880 = vmatpush3.bf16.msra.mxu0 %v948_v54 }
 0x1e6   :  { %881 = vmatprep.subr.bf16.mxu0 %v995_v0 }
 0x1e9   :  { %882 = vmatpush3.bf16.msra.mxu0 %v949_v55 }
 0x1ea   :  { %883 = vmatprep.subr.bf16.mxu0 %v995_v0 }
 0x1ed   :  { %884 = vmatpush3.bf16.msra.mxu0 %v950_v3 }
 0x1ee   :  { %885 = vmatprep.subr.bf16.mxu0 %v995_v0 }
 0x1f1   :  { %886 = vmatpush3.bf16.msra.mxu0 %v951_v4 }
 0x2a7   :  { %v321_v57 = vpop.f32.mrb[4].mxu0 }
 0x2a8   :  { %v1101_v58 = vadd.f32 %v717_v56, %v321_v57  ;;  %v849_v59 = vpop.f32.mrb[5].mxu0 }
 0x2a9   :  { %v324_v60 = vpop.f32.mrb[6].mxu0 }
 0x2aa   :  { %v1103_v61 = vadd.f32 %v717_v56, %v324_v60  ;;  %v850_v62 = vpop.f32.mrb[7].mxu0  ;;  %v328_v63 = vmax.f32 %v1101_v58, 0.0 }
 0x2ac   :  { %v329_v1 = vmax.f32 %v1103_v61, 0.0 }
 0x2ae   :  { %v347_v2 = vpack.c.bf16 %v329_v1, %v328_v63 }
 0x2b0   :  { %868 = vmatmul.mubr.bf16.vlgmr.msra.gmra.mrb[4].mxu1 %v347_v2 }
 0x2b1   :  { %907 = vmatprep.mubr.msk.bf16.mxu1 %vm996_vm0, %v995_v0  ;;  %892 = vmatpush3.bf16.msra.mxu1 %v952_v21 }
 0x2b2   :  { %893 = vmatprep.subr.bf16.mxu1 %v995_v0 }
 0x2b5   :  { %894 = vmatpush3.bf16.msra.mxu1 %v953_v22 }
 0x2b6   :  { %895 = vmatprep.subr.bf16.mxu1 %v995_v0 }
 0x2b9   :  { %896 = vmatpush3.bf16.msra.mxu1 %v954_v23 }
 0x2ba   :  { %897 = vmatprep.subr.bf16.mxu1 %v995_v0 }
 0x2bd   :  { %898 = vmatpush3.bf16.msra.mxu1 %v955_v25 }
 0x2be   :  { %899 = vmatprep.subr.bf16.mxu1 %v995_v0 }
 0x2c1   :  { %900 = vmatpush3.bf16.msra.mxu1 %v956_v27 }
 0x2c2   :  { %901 = vmatprep.subr.bf16.mxu1 %v995_v0 }
 0x2c5   :  { %902 = vmatpush3.bf16.msra.mxu1 %v957_v28 }
 0x2c6   :  { %903 = vmatprep.subr.bf16.mxu1 %v995_v0 }
 0x2c9   :  { %904 = vmatpush3.bf16.msra.mxu1 %v958_v29 }
 0x2ca   :  { %905 = vmatprep.subr.bf16.mxu1 %v995_v0  ;;  %v746_v0 = vld [vmem:[%s1143_s3 + $0x5] ss:$0 sm:$0xff] }
 0x2cd   :  { %906 = vmatpush3.bf16.msra.mxu1 %v959_v30 }
 0x383   :  { %v435_v6 = vpop.f32.mrb[4].mxu1 }
 0x384   :  { %v436_v7 = vadd.f32 %v726_v5, %v435_v6  ;;  %v869_v8 = vpop.f32.mrb[5].mxu1 }
 0x385   :  { %v438_v9 = vpop.f32.mrb[6].mxu1 }
 0x386   :  { %v735_v10 = vmul.f32 -1.442695, %v436_v7  ;;  %v439_v11 = vadd.f32 %v726_v5, %v438_v9  ;;  %v870_v12 = vpop.f32.mrb[7].mxu1  ;;  %v458_v13 = vmax.f32 %v436_v7, 0.0 }
 0x388   :  { %960 = vpow2.f32 %v735_v10  ;;  %v736_v14 = vmul.f32 -1.442695, %v439_v11  ;;  %v459_v15 = vmax.f32 %v439_v11, 0.0 }
 0x38a   :  { %962 = vpow2.f32 %v736_v14  ;;  %v477_v16 = vpack.c.bf16 %v459_v15, %v458_v13 }
 0x38c   :  { %888 = vmatmul.mubr.bf16.vlgmr.msra.gmra.mrb[8].mxu0 %v477_v16 }
 0x392   :  { %v961_v17 = vpop.eup %960 }
 0x393   :  { %v448_v18 = vadd.f32 1.0, %v961_v17 }
 0x394   :  { %v963_v19 = vpop.eup %962 }
 0x395   :  { %964 = vrcp.f32 %v448_v18  ;;  %v449_v20 = vadd.f32 1.0, %v963_v19 }
 0x397   :  { %966 = vrcp.f32 %v449_v20 }
 0x39f   :  { %v965_v24 = vpop.eup %964 }
 0x3a0   :  { %454 = vrot.lane.b32.xlu0 %v965_v24, %s997_s16 }
 0x3a1   :  { %v967_v26 = vpop.eup %966 }
 0x3a4   :  { %456 = vrot.lane.b32.xlu0 %v967_v26, %s997_s16 }
 0x412   :  { %v455_v43 = vpop.permute.xlu0 %454 }
 0x416   :  { %v457_v51 = vpop.permute.xlu0 %456 }
 0x45f   :  { %v565_v32 = vpop.f32.mrb[8].mxu0 }
 0x460   :  { %v566_v33 = vadd.f32 %v737_v31, %v565_v32  ;;  %v889_v34 = vpop.f32.mrb[9].mxu0 }
 0x461   :  { %v568_v35 = vpop.f32.mrb[10].mxu0 }
 0x462   :  { %v569_v36 = vadd.f32 %v737_v31, %v568_v35  ;;  %v890_v37 = vpop.f32.mrb[11].mxu0  ;;  %v572_v38 = vmax.f32 %v566_v33, 0.0 }
 0x464   :  { %v573_v39 = vmax.f32 %v569_v36, 0.0 }
 0x466   :  { %v591_v40 = vpack.c.bf16 %v573_v39, %v572_v38 }
 0x468   :  { %908 = vmatmul.mubr.bf16.vlgmr.msra.gmra.mrb[8].mxu1 %v591_v40 }
 0x53b   :  { %v679_v44 = vpop.f32.mrb[8].mxu1 }
 0x53c   :  { %v680_v45 = vadd.f32 %v746_v0, %v679_v44  ;;  %v909_v46 = vpop.f32.mrb[9].mxu1 }
 0x53d   :  { %v682_v47 = vpop.f32.mrb[10].mxu1 }
 0x53e   :  { %v683_v48 = vadd.f32 %v746_v0, %v682_v47  ;;  %v910_v49 = vpop.f32.mrb[11].mxu1  ;;  %v689_v50 = vsel %vm688_vm2, %v455_v43, %v680_v45 }
 0x53f   :  { %691 = vrot.lane.b32.xlu1 %v689_v50, %s998_s21 }
 0x540   :  { %v690_v52 = vsel %vm688_vm2, %v457_v51, %v683_v48 }
 0x543   :  { %693 = vrot.lane.b32.xlu1 %v690_v52, %s998_s21 }
 0x5b1   :  { %v692_v53 = vpop.permute.xlu1 %691 }
 0x5b2   :  { %v695_v54 = vadd.f32 %v692_v53, %v328_v63 }
 0x5b4   :  { %697 = vst [vmem:[%s1144_s4] sm:$0xff] %v695_v54 }
 0x5b5   :  { %v694_v55 = vpop.permute.xlu1 %693 }
 0x5b6   :  { %v696_v56 = vadd.f32 %v694_v55, %v329_v1 }
 0x5b8   :  { %698 = vst [vmem:[%s1144_s4 + $0x8] sm:$0xff] %v696_v56 }
 0x5b9   :  { %703 = vsyncpa [#allocation3], 1 }

</bundles_post_ra>
